<compile_context>
chip_gen: v7x
topology: tpu7x:2x2x1
jax: 0.10.0
libtpu: 0.0.40
codegen_flags: <defaults>
</compile_context>

<pallas_src>
import functools
import math

import jax
import jax.numpy as jnp
from jax import lax
from jax.experimental import pallas as pl
from jax.experimental.pallas import tpu as pltpu


def _round_up(n, m):
    return (n + m - 1) // m * m


def _pad_axis(a, axis, target):
    pad = target - a.shape[axis]
    if pad <= 0:
        return a
    widths = [(0, 0)] * a.ndim
    widths[axis] = (0, pad)
    return jnp.pad(a, widths)


def _pick_row_tile(S):
    """Row-tile size: divides S, multiple of 8; ~256-512 preferred for the 256-wide MXU."""
    if S <= 512:
        return S
    for t in (512, 256):
        if S % t == 0:
            return t
    for t in range(512, 7, -8):
        if S % t == 0:
            return t
    # TODO(synk): pad S / handle a ragged last tile when S has no multiple-of-8 divisor <= 512.
    return S


def _self_attention_kernel(x_ref, wqkv_ref, wo_ref, o_ref, kqv_ref, *, a_pad, row_tile):
    """One (batch b, row-tile qi) grid step.

    x_ref:    (1, S, D_in)        input dtype (cast to bf16 in-kernel)
    wqkv_ref: (D_in, 3*A_pad)     bf16, columns [Wk^T/sqrt(A) | Wq^T | Wv^T], zero-padded
    wo_ref:   (A_pad, D_out_pad)  bf16, zero-padded
    o_ref:    (1, Tq, D_out_pad)  f32
    kqv_ref:  (S, 3*A_pad)        bf16 persistent scratch holding [K/sqrt(A) | Q | V]
    """
    qi = pl.program_id(1)

    # Fused K/Q/V projection once per batch (row-tile 0); persists in the VMEM
    # scratch across the sequential ("arbitrary") row-tile axis.
    @pl.when(qi == 0)
    def _():
        x = x_ref[0].astype(jnp.bfloat16)                              # (S, D_in)
        qkv = jnp.dot(x, wqkv_ref[...], preferred_element_type=jnp.float32)
        kqv_ref[...] = qkv.astype(jnp.bfloat16)                        # (S, 3*A_pad)

    row0 = pl.multiple_of(qi * row_tile, row_tile)
    k_tile = kqv_ref[pl.ds(row0, row_tile), 0 * a_pad:1 * a_pad]       # (Tq, A_pad), pre-scaled
    q_all = kqv_ref[:, 1 * a_pad:2 * a_pad]                            # (S, A_pad)
    v_all = kqv_ref[:, 2 * a_pad:3 * a_pad]                            # (S, A_pad)

    # logits[i, j] = (K_i / sqrt(A)) . Q_j — contract on A directly (same pattern
    # as the stock flash kernel).
    # TODO(synk): check pl.lower_as_mlir for a per-tile vxpose of Q at large S;
    # if present, store Q^T once per batch in the scratch instead.
    logits = lax.dot_general(
        k_tile, q_all, (((1,), (1,)), ((), ())), preferred_element_type=jnp.float32
    )  # (Tq, S) f32

    # Numerically stable softmax; normalization deferred until after P@V
    # (O(Tq*A_pad) rescale instead of O(Tq*S)).
    m = jnp.max(logits, axis=-1, keepdims=True)
    e = jnp.exp(logits - m)                                            # (Tq, S) f32
    denom_inv = pl.reciprocal(jnp.sum(e, axis=-1, keepdims=True), approx=True)

    pv = jnp.dot(e.astype(jnp.bfloat16), v_all,
                 preferred_element_type=jnp.float32)                   # (Tq, A_pad) f32
    attn = (pv * denom_inv).astype(jnp.bfloat16)
    out = jnp.dot(attn, wo_ref[...], preferred_element_type=jnp.float32)  # (Tq, D_out_pad)

    o_ref[0] = out.astype(o_ref.dtype)


def self_attention(x, wk, wq, wv, wo, *, row_tile=None):
    """x: (B, S, D_in); wk/wq/wv: (A, D_in); wo: (D_out, A) — PyTorch Linear weights."""
    B, S, D_in = x.shape
    A = wk.shape[0]
    D_out = wo.shape[0]

    # Lane-pad attention / output feature dims to 128 multiples (lane-dense stores).
    A_pad = _round_up(A, 128)
    D_out_pad = _round_up(D_out, 128)

    # Fuse + pad + pre-cast the weights once; fold 1/sqrt(A) into the Wk columns.
    scale = jnp.float32(1.0 / math.sqrt(A))
    wk_t = _pad_axis(wk.T * scale, 1, A_pad)
    wq_t = _pad_axis(wq.T, 1, A_pad)
    wv_t = _pad_axis(wv.T, 1, A_pad)
    wqkv = jnp.concatenate([wk_t, wq_t, wv_t], axis=1).astype(jnp.bfloat16)        # (D_in, 3*A_pad)
    wo_t = _pad_axis(_pad_axis(wo.T, 0, A_pad), 1, D_out_pad).astype(jnp.bfloat16)  # (A_pad, D_out_pad)

    Tq = row_tile if row_tile is not None else _pick_row_tile(S)
    assert S % Tq == 0 and (Tq % 8 == 0 or Tq == S), "row tile must divide S"
    n_row_tiles = S // Tq

    kernel = functools.partial(_self_attention_kernel, a_pad=A_pad, row_tile=Tq)

    # Rough VMEM footprint of one grid step (blocks + scratch + big temporaries).
    vmem_est = (
        2 * S * D_in * x.dtype.itemsize            # x block (double-buffered)
        + 2 * Tq * D_out_pad * 4                   # out block (double-buffered, f32)
        + (D_in * 3 * A_pad + A_pad * D_out_pad) * 2   # bf16 weights, single-buffered
        + S * 3 * A_pad * 2                        # persistent K|Q|V scratch (bf16)
        + S * 3 * A_pad * 4                        # qkv f32 temp (row-tile 0)
        + 2 * Tq * S * 4                           # logits + exp (f32)
        + 2 * Tq * A_pad * 4                       # pv / attn temps
    )
    # 56 MiB cap keeps headroom under v7x's 64 MiB physical VMEM; re-derive per target.
    vmem_limit = int(min(56 * 1024 * 1024, max(32 * 1024 * 1024, 2 * vmem_est)))

    out_padded = pl.pallas_call(
        kernel,
        out_shape=jax.ShapeDtypeStruct((B, S, D_out_pad), jnp.float32),
        grid_spec=pltpu.PrefetchScalarGridSpec(
            num_scalar_prefetch=0,
            grid=(B, n_row_tiles),   # B megacore-parallel; row tiles sequential (scratch reuse)
            in_specs=[
                pl.BlockSpec((1, S, D_in), lambda b, qi: (b, 0, 0)),           # x: resident across qi
                pl.BlockSpec((D_in, 3 * A_pad), lambda b, qi: (0, 0),
                             pipeline_mode=pl.Buffered(1)),                    # fused [Wk|Wq|Wv]^T
                pl.BlockSpec((A_pad, D_out_pad), lambda b, qi: (0, 0),
                             pipeline_mode=pl.Buffered(1)),                    # Wo^T
            ],
            out_specs=pl.BlockSpec((1, Tq, D_out_pad), lambda b, qi: (b, qi, 0)),
            scratch_shapes=[pltpu.VMEM((S, 3 * A_pad), jnp.bfloat16)],
        ),
        compiler_params=pltpu.CompilerParams(
            dimension_semantics=("parallel", "arbitrary"),
            vmem_limit_bytes=vmem_limit,
        ),
    )(x, wqkv, wo_t)

    # Slice off the lane padding.
    return out_padded[:, :, :D_out]


def _reference(x, wk, wq, wv, wo, attention_size):
    # Pure-JAX f32 reference mirroring the PyTorch forward literally.
    K = jnp.einsum("bsd,ad->bsa", x, wk)
    Q = jnp.einsum("bsd,ad->bsa", x, wq)
    V = jnp.einsum("bsd,ad->bsa", x, wv)
    logits = jnp.einsum("bsa,bta->bst", K, Q) / jnp.sqrt(jnp.float32(attention_size))
    weight = jax.nn.softmax(logits, axis=-1)
    attn = jnp.einsum("bst,bta->bsa", weight, V)
    return jnp.einsum("bsa,oa->bso", attn, wo)


if __name__ == "__main__":
    # Small shapes consistent with the module: (batch, seq, input_size)
    B, S = 2, 8
    input_size, attention_size, output_size = 32, 16, 32

    key = jax.random.PRNGKey(0)
    kx, kk, kq, kv, ko = jax.random.split(key, 5)

    x = jax.random.normal(kx, (B, S, input_size), dtype=jnp.float32)

    # Deterministic parameter init (PyTorch Linear weight shapes: (out, in)).
    def init_linear(k, out_f, in_f):
        bound = 1.0 / math.sqrt(in_f)
        return jax.random.uniform(k, (out_f, in_f), jnp.float32, -bound, bound)

    wk = init_linear(kk, attention_size, input_size)
    wq = init_linear(kq, attention_size, input_size)
    wv = init_linear(kv, attention_size, input_size)
    wo = init_linear(ko, output_size, attention_size)

    out = self_attention(x, wk, wq, wv, wo)
    out = jax.block_until_ready(out)

    ref = _reference(x, wk, wq, wv, wo, attention_size)
    assert out.shape == (B, S, output_size)
    # bf16 MXU operands + approx reciprocal -> loosened tolerance vs f32 reference.
    assert jnp.allclose(out, ref, atol=5e-2, rtol=5e-2), "mismatch vs reference"

    print("KERNEL_OK")
</pallas_src>

<mosaic_0001>
module attributes {stable_mosaic.version = 11 : i64} {
  func.func @_self_attention_kernel(%arg0: i32, %arg1: i32, %arg2: memref<1x8x32xf32, #tpu.memory_space<vmem>>, %arg3: memref<32x384xbf16, #tpu.memory_space<vmem>>, %arg4: memref<128x128xbf16, #tpu.memory_space<vmem>>, %arg5: memref<1x8x128xf32, #tpu.memory_space<vmem>>, %arg6: memref<8x384xbf16, #tpu.memory_space<vmem>>) attributes {dimension_semantics = [#tpu.dimension_semantics<parallel>, #tpu.dimension_semantics<arbitrary>], iteration_bounds = array<i64: 2, 1>, scalar_prefetch = 0 : i64, scratch_operands = 1 : i64, tpu.core_type = #tpu.core_type<tc>, window_params = [{transform_indices = @transform_0, window_bounds = array<i64: 1, 8, 32>}, {pipeline_mode = #tpu.pipeline_mode<synchronous>, transform_indices = @transform_1, window_bounds = array<i64: 32, 384>}, {pipeline_mode = #tpu.pipeline_mode<synchronous>, transform_indices = @transform_2, window_bounds = array<i64: 128, 128>}, {transform_indices = @transform_3, window_bounds = array<i64: 1, 8, 128>}]} {
    %c0_i32 = arith.constant 0 : i32
    %0 = arith.cmpi eq, %arg1, %c0_i32 : i32
    %1 = arith.extui %0 : i1 to i32
    %c0_i32_0 = arith.constant 0 : i32
    %2 = arith.cmpi ne, %1, %c0_i32_0 : i32
    scf.if %2 {
      %c0_12 = arith.constant 0 : index
      %c0_13 = arith.constant 0 : index
      %c0_14 = arith.constant 0 : index
      %28 = vector.load %arg2[%c0_12, %c0_13, %c0_14] : memref<1x8x32xf32, #tpu.memory_space<vmem>>, vector<1x8x32xf32>
      %29 = vector.shape_cast %28 : vector<1x8x32xf32> to vector<8x32xf32>
      %30 = arith.truncf %29 : vector<8x32xf32> to vector<8x32xbf16>
      %c0_15 = arith.constant 0 : index
      %c0_16 = arith.constant 0 : index
      %31 = vector.load %arg3[%c0_15, %c0_16] : memref<32x384xbf16, #tpu.memory_space<vmem>>, vector<32x384xbf16>
      %cst_17 = arith.constant dense<0.000000e+00> : vector<8x384xf32>
      %32 = tpu.matmul %30, %31, %cst_17 {dimension_numbers = #tpu.dot_dimension_numbers<[1], [0], [0], [1], [0, 0, 1, 1], [], []>} : vector<8x32xbf16>, vector<32x384xbf16>, vector<8x384xf32> -> vector<8x384xf32>
      %33 = arith.truncf %32 : vector<8x384xf32> to vector<8x384xbf16>
      %c0_18 = arith.constant 0 : index
      %c0_19 = arith.constant 0 : index
      %34 = vector.load %arg6[%c0_18, %c0_19] : memref<8x384xbf16, #tpu.memory_space<vmem>>, vector<8x384xbf16>
      tpu.vector_store %arg6[%c0_18, %c0_19], %33 {strides = array<i32>} : memref<8x384xbf16, #tpu.memory_space<vmem>>, vector<8x384xbf16>,
    } else {
    }
    %c8_i32 = arith.constant 8 : i32
    %3 = arith.muli %arg1, %c8_i32 : i32
    %4 = tpu.assume_multiple %3, 8 : i32
    %5 = arith.index_cast %4 : i32 to index
    %c0 = arith.constant 0 : index
    %6 = vector.load %arg6[%5, %c0] : memref<8x384xbf16, #tpu.memory_space<vmem>>, vector<8x128xbf16>
    %c0_1 = arith.constant 0 : index
    %c128 = arith.constant 128 : index
    %7 = vector.load %arg6[%c0_1, %c128] : memref<8x384xbf16, #tpu.memory_space<vmem>>, vector<8x128xbf16>
    %c0_2 = arith.constant 0 : index
    %c256 = arith.constant 256 : index
    %8 = vector.load %arg6[%c0_2, %c256] : memref<8x384xbf16, #tpu.memory_space<vmem>>, vector<8x128xbf16>
    %cst = arith.constant dense<0.000000e+00> : vector<8x8xf32>
    %9 = tpu.matmul %6, %7, %cst {dimension_numbers = #tpu.dot_dimension_numbers<[1], [1], [0], [0], [0, 0, 1, 0], [], []>} : vector<8x128xbf16>, vector<8x128xbf16>, vector<8x8xf32> -> vector<8x8xf32>
    %cst_3 = arith.constant dense<0xFF800000> : vector<8xf32>
    %10 = vector.multi_reduction <maximumf>, %9, %cst_3 [1] : vector<8x8xf32> to vector<8xf32>
    %11 = vector.shape_cast %10 : vector<8xf32> to vector<8x1xf32>
    %12 = vector.broadcast %11 : vector<8x1xf32> to vector<8x8xf32>
    %13 = arith.subf %9, %12 : vector<8x8xf32>
    %14 = math.exp %13 : vector<8x8xf32>
    %cst_4 = arith.constant dense<0.000000e+00> : vector<8xf32>
    %15 = vector.multi_reduction <add>, %14, %cst_4 [1] : vector<8x8xf32> to vector<8xf32>
    %16 = vector.shape_cast %15 : vector<8xf32> to vector<8x1xf32>
    %17 = tpu.reciprocal %16 {approx = true} : vector<8x1xf32> -> vector<8x1xf32>
    %18 = arith.truncf %14 : vector<8x8xf32> to vector<8x8xbf16>
    %cst_5 = arith.constant dense<0.000000e+00> : vector<8x128xf32>
    %19 = tpu.matmul %18, %8, %cst_5 {dimension_numbers = #tpu.dot_dimension_numbers<[1], [0], [0], [1], [0, 0, 1, 1], [], []>} : vector<8x8xbf16>, vector<8x128xbf16>, vector<8x128xf32> -> vector<8x128xf32>
    %20 = vector.broadcast %17 : vector<8x1xf32> to vector<8x128xf32>
    %21 = arith.mulf %19, %20 : vector<8x128xf32>
    %22 = arith.truncf %21 : vector<8x128xf32> to vector<8x128xbf16>
    %c0_6 = arith.constant 0 : index
    %c0_7 = arith.constant 0 : index
    %23 = vector.load %arg4[%c0_6, %c0_7] : memref<128x128xbf16, #tpu.memory_space<vmem>>, vector<128x128xbf16>
    %cst_8 = arith.constant dense<0.000000e+00> : vector<8x128xf32>
    %24 = tpu.matmul %22, %23, %cst_8 {dimension_numbers = #tpu.dot_dimension_numbers<[1], [0], [0], [1], [0, 0, 1, 1], [], []>} : vector<8x128xbf16>, vector<128x128xbf16>, vector<8x128xf32> -> vector<8x128xf32>
    %c0_9 = arith.constant 0 : index
    %c0_10 = arith.constant 0 : index
    %c0_11 = arith.constant 0 : index
    %25 = vector.load %arg5[%c0_9, %c0_10, %c0_11] : memref<1x8x128xf32, #tpu.memory_space<vmem>>, vector<1x8x128xf32>
    %26 = vector.shape_cast %25 : vector<1x8x128xf32> to vector<8x128xf32>
    %27 = vector.shape_cast %24 : vector<8x128xf32> to vector<1x8x128xf32>
    tpu.vector_store %arg5[%c0_9, %c0_10, %c0_11], %27 {strides = array<i32>} : memref<1x8x128xf32, #tpu.memory_space<vmem>>, vector<1x8x128xf32>,
    return
  }
  func.func @transform_0(%arg0: i32, %arg1: i32) -> (i32, i32, i32) {
    %c0_i32 = arith.constant 0 : i32
    %c0_i32_0 = arith.constant 0 : i32
    %c0_i32_1 = arith.constant 0 : i32
    return %arg0, %c0_i32, %c0_i32_0 : i32, i32, i32
  }
  func.func @transform_1(%arg0: i32, %arg1: i32) -> (i32, i32) {
    %c0_i32 = arith.constant 0 : i32
    %c0_i32_0 = arith.constant 0 : i32
    %c0_i32_1 = arith.constant 0 : i32
    return %c0_i32, %c0_i32_0 : i32, i32
  }
  func.func @transform_2(%arg0: i32, %arg1: i32) -> (i32, i32) {
    %c0_i32 = arith.constant 0 : i32
    %c0_i32_0 = arith.constant 0 : i32
    %c0_i32_1 = arith.constant 0 : i32
    return %c0_i32, %c0_i32_0 : i32, i32
  }
  func.func @transform_3(%arg0: i32, %arg1: i32) -> (i32, i32, i32) {
    %c0_i32 = arith.constant 0 : i32
    %c0_i32_0 = arith.constant 0 : i32
    return %arg0, %arg1, %c0_i32 : i32, i32, i32
  }
}

</mosaic_0001>

<bundles_post_ra>
// kernel: tpu_custom_call.1
= control target key start
LH: loop header
LB: loop body
LE: loop exit
PB: predicated region body
PF: predicated region fallthrough
CT: control target
= control target key end

     0   :  { %8 = vsyncpa [#allocation4], 0  ;;  %s1389_s0 = inlined_call_operand.hbm [shape: f32[2,8,32], index: 0, kind: input, shape index: {}]   ;;  %s1390_s1 = inlined_call_operand.hbm [shape: bf16[32,384], index: 1, kind: input, shape index: {}]   ;;  %s1391_s2 = inlined_call_operand.hbm [shape: bf16[128,128], index: 2, kind: input, shape index: {}]   ;;  %s1392_s3 = inlined_call_operand.hbm [shape: f32[2,8,128], index: 3, kind: output, shape index: {}]  }
   0x1   :  { %10 = vsyncpa [#allocation4 + $0x1], 0 }
   0x2   :  { %11 = vsyncpa [#allocation7], 0 }
   0x3   :  { %12 = vsyncpa [#allocation5], 0 }
   0x4   :  { %14 = vsyncpa [#allocation5 + $0x1], 0  ;;  %s1115_s12 = smov 0   ;;  %s1117_s13 = smov 0  }
   0x5   :  { %s1119_s14 = smov 0   ;;  %s1121_s15 = smov 0  }
   0x6   :  { %s1123_s16 = smov 0   ;;  %s1125_s17 = smov 0  }
   0x7 LB: > { %s706_s18 = sadd.s32 4294967295, %s1082_s17   ;;  %s707_s19 = sadd.s32 4294967294, %s1082_s17   ;;  %s1082_s17 = sphi %s1125_s17, %s20_s17   ;;  %s1078_s16 = sphi %s1123_s16, %s1414_s16   ;;  %s1074_s15 = sphi %s1121_s15, %s1413_s15   ;;  %s1070_s14 = sphi %s1119_s14, %s1412_s14   ;;  %s1066_s13 = sphi %s1117_s13, %s1411_s13   ;;  %s1062_s12 = sphi %s1115_s12, %s1410_s12  }
   0x8   : > { %p52_p0 = scmp.ne.s32.totalorder %s1066_s13, %s1062_s12  ;;  %p1149_p1 = scmp.eq.s32.totalorder %s706_s18, 0 }
   0x9   : > { %p1153_p2 = scmp.eq.s32.totalorder %s706_s18, 1  ;;  %p126_p3 = scmp.eq.s32.totalorder %s707_s19, 1 }
   0xa   : > { %s1397_s20 = scalar_select %p1149_p1, 1, 0 }
   0xb   : > { %p1159_p4 = por %p1149_p1, %p52_p0  ;;  %p708_p5 = scmp.ge.s32.totalorder %s1082_s17, 1 }
   0xc   : > { %p1164_p6 = por %p126_p3, %p52_p0  ;;  %p133_p7 = scmp.lt.s32.totalorder %s1082_s17, 3 }
   0xd   : > { %s1399_s22 = scalar_select %p1159_p4, 1, 0 }
   0xe   : > { %s1400_s23 = scalar_select %p1164_p6, 1, 0 }
   0xf   : > { %p1169_p8 = pnand %p708_p5, %p133_p7  ;;  %s1084_s25 = smov [#allocation6]  }
  0x10   : > { %s145_s26 = sshll.u32 %s1084_s25, 4  ;;  %s1085_s28 = smov [#allocation8]   ;;  %s1173_s26 = int_to_ptr.vmem [resolvable:$true] %s145_s26 }
  0x11   : > { %p812_p9 = pneg %p1169_p8  ;;  %s158_s29 = sshll.u32 %s1085_s28, 4  ;;  %s1184_s29 = int_to_ptr.vmem [resolvable:$true] %s158_s29 }
  0x12   : > { %s910_s5 = scalar_lea.hbm %s1390_s1, 768 }
  0x13   : > { %p1180_p11 = pnand %p812_p9, %p1149_p1  ;;  %p911_p12 = scmp.ne.s32.totalorder %s1390_s1, %s910_s5 }
  0x14   : > { %p917_p5 = scmp.lt.u32.totalorder %s910_s5, %s1390_s1 }
  0x15   : > { %p912_p13 = pneg %p1180_p11 }
  0x17   : > { %p913_p0 = pnand %p912_p13, %p911_p12 }
  0x19   : > { %p914_p3 = pneg %p913_p0 }
  0x1b   : > { %p919_p7 = pnand %p917_p5, %p914_p3 }
  0x1d   : > { %922 = shalt.err (!%p919_p7)
}
  0x1e   : > { %s923_s10 = scalar_lea.vmem %s1173_s26, 768  ;;  %p931_p1 = scmp.lt.s32.totalorder %s1173_s26, %s1173_s26 }
  0x1f   : > { %p924_p9 = scmp.ne.s32.totalorder %s1173_s26, %s923_s10  ;;  %p932_p12 = scmp.lt.s32.totalorder %s923_s10, %s923_s10 }
  0x21   : > { %p926_p10 = pnand %p924_p9, %p912_p13  ;;  %p933_p0 = por %p932_p12, %p931_p1 }
  0x23   : > { %p927_p6 = pneg %p926_p10 }
  0x25   : > { %p934_p4 = pnand %p933_p0, %p927_p6 }
  0x27   : > { %937 = shalt.err (!%p934_p4)
}
  0x28   : > { %s1086_s11 = smov 192   ;;  %s1087_s18 = smov 12  }
  0x29   : > { %815 = dma.hbm_to_vmem [thread:$0]  (!%p1180_p11), %s1390_s1, 768, %s1173_s26, [#allocation7], %s1086_s11, %s1086_s11, %s1087_s18  }
  0x2a   : > { %s938_s4 = scalar_lea.hbm %s1391_s2, 1024 }
  0x2b   : > { %p939_p1 = scmp.ne.s32.totalorder %s1391_s2, %s938_s4  ;;  %p945_p10 = scmp.lt.u32.totalorder %s938_s4, %s1391_s2 }
  0x2d   : > { %p941_p4 = pnand %p939_p1, %p912_p13 }
  0x2f   : > { %p942_p6 = pneg %p941_p4 }
  0x31   : > { %p947_p3 = pnand %p945_p10, %p942_p6 }
  0x33   : > { %950 = shalt.err (!%p947_p3)
}
  0x34   : > { %s951_s26 = scalar_lea.vmem %s1184_s29, 1024  ;;  %p959_p12 = scmp.lt.s32.totalorder %s1184_s29, %s1184_s29 }
  0x35   : > { %p952_p5 = scmp.ne.s32.totalorder %s1184_s29, %s951_s26  ;;  %p960_p0 = scmp.lt.s32.totalorder %s951_s26, %s951_s26 }
  0x37   : > { %p954_p7 = pnand %p952_p5, %p912_p13  ;;  %p961_p1 = por %p960_p0, %p959_p12 }
  0x39   : > { %p955_p9 = pneg %p954_p7 }
  0x3b   : > { %p962_p4 = pnand %p961_p1, %p955_p9 }
  0x3d   : > { %965 = shalt.err (!%p962_p4)
}
  0x3e   : > { %s1088_s9 = smov 64   ;;  %s1089_s10 = smov 4  }
  0x3f   : > { %818 = dma.hbm_to_vmem [thread:$0]  (!%p1180_p11), %s1391_s2, 1024, %s1184_s29, [#allocation7], %s1088_s9, %s1088_s9, %s1089_s10  }
  0x40   : > { %s32_s19 = sadd.s32 1, %s1078_s16  ;;  %s39_s25 = sadd.s32 1, %s1070_s14 }
  0x41   : > { %p34_p13 = scmp.ge.s32.totalorder %s32_s19, 2  ;;  %p46_p6 = scmp.ne.s32.totalorder %s1070_s14, %s1066_s13 }
  0x42   : > { %p47_p10 = scmp.eq.s32.totalorder %s1082_s17, 0  ;;  %p829_p3 = scmp.lt.s32.totalorder %s1082_s17, 2 }
  0x43   : > { %s1416_s19 = smov (%p34_p13, %s32_s19), 0  ;;  %p1248_p7 = por %p1153_p2, %p46_p6 }
  0x44   : > { %p48_p5 = por %p47_p10, %p46_p6  ;;  %s36_s27 = ssub.s32 %s1078_s16, %s1416_s19 }
  0x45   : > { %s1403_s28 = scalar_select %p1248_p7, 1, 0 }
  0x46   : > { %s172_s30 = sand.u32 1, %s1070_s14   ;;  %p37_p9 = scmp.eq.s32.totalorder %s36_s27, 0 }
  0x47   : > { %s712_s29 = sshll.u32 %s172_s30, 3  ;;  %s713_s4 = sshll.u32 %s1078_s16, 7 }
  0x48   : > { %s1257_s5 = scalar_select %p37_p9, %s1070_s14, %s39_s25  }
  0x49   : > { %s1262_s8 = scalar_lea.hbm %s1389_s0, %s713_s4  ;;  %s176_s21 = scalar_lea.vmem [#allocation3], %s712_s29 }
  0x4a   : > { %s183_s26 = sshll.u32 %s176_s21, 4  ;;  %p1266_p2 = pnand %p829_p3, %p48_p5  ;;  %s1270_s26 = int_to_ptr.vmem [resolvable:$true] %s183_s26 }
  0x4b   : > { %s173_s10 = scalar_lea.sflag [#allocation4], %s172_s30  ;;  %s966_s11 = scalar_lea.hbm %s1262_s8, 128 }
  0x4c   : > { %p967_p11 = scmp.ne.s32.totalorder %s1262_s8, %s966_s11  ;;  %p968_p12 = pneg %p1266_p2 }
  0x4d   : > { %s971_s27 = scalar_lea.hbm %s1389_s0, 256  ;;  %p972_p4 = scmp.lt.u32.totalorder %s1262_s8, %s1389_s0 }
  0x4e   : > { %p969_p0 = pnand %p968_p12, %p967_p11  ;;  %p973_p13 = scmp.lt.u32.totalorder %s971_s27, %s966_s11 }
  0x4f   : > { %p975_p10 = scmp.lt.u32.totalorder %s966_s11, %s1262_s8 }
  0x50   : > { %p970_p1 = pneg %p969_p0  ;;  %p974_p6 = por %p973_p13, %p972_p4 }
  0x52   : > { %p976_p3 = por %p975_p10, %p974_p6 }
  0x54   : > { %p977_p5 = pnand %p976_p3, %p970_p1 }
  0x56   : > { %980 = shalt.err (!%p977_p5)
}
  0x57   : > { %s981_s30 = scalar_lea.vmem %s1270_s26, 128  ;;  %s1090_s6 = smov [#allocation3]  }
  0x58   : > { %p982_p9 = scmp.ne.s32.totalorder %s1270_s26, %s981_s30  ;;  %s986_s7 = sshll.u32 %s1090_s6, 4  ;;  %s987_s7 = int_to_ptr.vmem [resolvable:$false] %s986_s7 }
  0x59   : > { %s988_s21 = scalar_lea.vmem %s987_s7, 256  ;;  %p989_p7 = scmp.lt.s32.totalorder %s1270_s26, %s987_s7 }
  0x5a   : > { %p984_p11 = pnand %p982_p9, %p968_p12  ;;  %p990_p4 = scmp.lt.s32.totalorder %s988_s21, %s981_s30 }
  0x5c   : > { %p985_p0 = pneg %p984_p11  ;;  %p991_p13 = por %p990_p4, %p989_p7 }
  0x5e   : > { %p992_p6 = pnand %p991_p13, %p985_p0 }
  0x60   : > { %995 = shalt.err (!%p992_p6)
}
  0x61   : > { %822 = dma.hbm_to_vmem [thread:$0]  (!%p1266_p2), %s1262_s8, 128, %s1270_s26, %s173_s10  }
  0x62   : > { %192 = sbr.rel (%p1169_p8) target bundleno = 1164 (0x48c), region = 32  ;;  %s1300_s11 = sand.u32 (!%p1169_p8), 1, %s1066_s13  }
  0x63   : > { %s715_s18 = sshll.u32 (!%p1169_p8), %s1300_s11, 3  ;;  %s195_s25 = scalar_lea.sflag (!%p1169_p8), [#allocation4], %s1300_s11 }
  0x64   : > { %s198_s27 = scalar_lea.vmem (!%p1169_p8), [#allocation3], %s715_s18  ;;  %p1405_p7 = scmp.ne.s32.totalorder (!%p1169_p8), %s1399_s22, 0 }
  0x69   : > { %1049 = dma.done.wait (%p1405_p7), %s195_s25, 128  }
  0x6a   : > { %1051 = vsyncadd (%p1405_p7), %s195_s25, 4294967168  ;;  %p1406_p2 = scmp.ne.s32.totalorder %s1397_s20, 0 }
  0x6c   : > { %1053 = dma.done.wait (%p1406_p2), [#allocation7], 1792  }
  0x6d   : > { %1055 = vsyncadd (%p1406_p2), [#allocation7], 4294965504  ;;  %v1091_v0 = vmov 0   ;;  %v1092_v1 = vmov 0.0   ;;  %v890_v2 = vld [vmem:[#allocation6 + $0x4] ss:$12 sps:$4 sm:$0xff]  }
  0x6e   : > { %312 = vmatprep.mubr.bf16.mxu1 %v1091_v0  ;;  %780 = vmatprep.subr.bf16.mxu0 %v1092_v1  ;;  %v892_v3 = vld [vmem:[#allocation6] ss:$12 sps:$4 sm:$0xff]   ;;  %v893_v4 = vld [vmem:[#allocation6 + $0x1c] ss:$12 sps:$4 sm:$0xff]   ;;  %v895_v5 = vld [vmem:[#allocation6 + $0x18] ss:$12 sps:$4 sm:$0xff]  }
  0x6f   : > { %280 = vmatprep.subr.bf16.mxu1 %v890_v2  ;;  %v234_v6 = vld [vmem:[%s198_s27] sm:$0xff]  ;;  %vm276_vm0 = vcmask 261120   ;;  %v897_v9 = vld [vmem:[#allocation6 + $0x20] ss:$12 sps:$4 sm:$0xff]   ;;  %vm1093_vm1 = vmmov 0   ;;  %vm440_vm2 = vcmask 1043456  }
  0x70   : > { %281 = vmatpush1.bf16.msra.mxu1 %v892_v3  ;;  %v896_v7 = vld [vmem:[#allocation6 + $0x8] ss:$12 sps:$4 sm:$0xff]   ;;  %v235_v8 = vpack.c.bf16 %v234_v6, %v234_v6  ;;  %796 = vmatprep.mubr.msk.bf16.mxu0 %vm1093_vm1, %v1092_v1  ;;  %vm425_vm3 = vcmask 64512   ;;  %v899_v36 = vld [vmem:[#allocation8 + $0x8] sm:$0xff]   ;;  %v900_v37 = vld [vmem:[#allocation8 + $0x10] sm:$0xff]   ;;  %s228_s20 = scalar_lea.vmem [#allocation9], %s715_s18 }
  0x71   : > { %282 = vmatprep.subr.bf16.mxu1 %v893_v4  ;;  %v898_v35 = vld [vmem:[#allocation8] sm:$0xff]   ;;  %v901_v38 = vld [vmem:[#allocation8 + $0x18] sm:$0xff]   ;;  %v903_v40 = vld [vmem:[#allocation8 + $0x28] sm:$0xff]   ;;  %s606_s22 = sshll.u32 %s228_s20, 4  ;;  %s739_s24 = sshll.u32 %s1074_s15, 7  ;;  %s1337_s22 = int_to_ptr.vmem [resolvable:$true] %s606_s22 }
  0x72   : > { %781 = vmatpush3.bf16.msra.mxu0 %v898_v35  ;;  %v902_v39 = vld [vmem:[#allocation8 + $0x20] sm:$0xff]   ;;  %v904_v41 = vld [vmem:[#allocation8 + $0x30] sm:$0xff]   ;;  %v905_v42 = vld [vmem:[#allocation8 + $0x38] sm:$0xff]   ;;  %s1342_s9 = scalar_lea.hbm %s1392_s3, %s739_s24  ;;  %s592_s10 = scalar_lea.sflag [#allocation5], %s1300_s11 }
  0x73   : > { %782 = vmatprep.subr.bf16.mxu0 %v1092_v1  ;;  %s996_s29 = scalar_lea.vmem %s1337_s22, 128  ;;  %p1407_p12 = scmp.ne.s32.totalorder %s1403_s28, 0 }
  0x74   : > { %283 = vmatpush1.bf16.msra.mxu1 %v895_v5  ;;  %p997_p8 = scmp.ne.s32.totalorder %s1337_s22, %s996_s29  ;;  %s1094_s15 = smov [#allocation9]  }
  0x75   : > { %760 = vmatprep.subr.bf16.mxu1 %v1092_v1  ;;  %s1000_s4 = sshll.u32 %s1094_s15, 4  ;;  %s1001_s4 = int_to_ptr.vmem [resolvable:$false] %s1000_s4 }
  0x76   : > { %783 = vmatpush3.bf16.msra.mxu0 %v899_v36  ;;  %p998_p1 = pnand %p997_p8, %p1407_p12  ;;  %s1002_s30 = scalar_lea.vmem %s1001_s4, 256 }
  0x77   : > { %725 = vmatmul.mubr.msk.bf16.vlgmr.msra.gmra.mrb[0].mxu1 %vm276_vm0, %v235_v8  ;;  %784 = vmatprep.subr.bf16.mxu0 %v1092_v1  ;;  %p1003_p3 = scmp.lt.s32.totalorder %s1337_s22, %s1001_s4  ;;  %p1004_p5 = scmp.lt.s32.totalorder %s1002_s30, %s996_s29 }
  0x78   : > { %761 = vmatpush3.bf16.msra.mxu1 %v896_v7  ;;  %764 = vmatprep.mubr.msk.bf16.mxu1 %vm1093_vm1, %v1092_v1  ;;  %p999_p10 = pneg %p998_p1 }
  0x79   : > { %762 = vmatprep.subr.bf16.mxu1 %v1092_v1  ;;  %p1005_p9 = por %p1004_p5, %p1003_p3 }
  0x7a   : > { %785 = vmatpush3.bf16.msra.mxu0 %v900_v37 }
  0x7b   : > { %786 = vmatprep.subr.bf16.mxu0 %v1092_v1  ;;  %p1006_p11 = pnand %p1005_p9, %p999_p10 }
  0x7c   : > { %763 = vmatpush3.bf16.msra.mxu1 %v897_v9 }
  0x7d   : > { %768 = vmatprep.subr.bf16.mxu1 %v1092_v1 }
  0x7e   : > { %787 = vmatpush3.bf16.msra.mxu0 %v901_v38 }
  0x7f   : > { %765 = vmatmul.mubr.msk.bf16.vlgmr.msra.gmra.mrb[4].mxu1 %vm276_vm0, %v235_v8  ;;  %788 = vmatprep.subr.bf16.mxu0 %v1092_v1 }
  0x80   : > { %770 = vmatprep.mubr.msk.bf16.mxu1 %vm1093_vm1, %v1092_v1 }
  0x82   : > { %789 = vmatpush3.bf16.msra.mxu0 %v902_v39 }
  0x83   : > { %790 = vmatprep.subr.bf16.mxu0 %v1092_v1 }
  0x86   : > { %791 = vmatpush3.bf16.msra.mxu0 %v903_v40 }
  0x87   : > { %792 = vmatprep.subr.bf16.mxu0 %v1092_v1 }
  0x8a   : > { %793 = vmatpush3.bf16.msra.mxu0 %v904_v41 }
  0x8b   : > { %794 = vmatprep.subr.bf16.mxu0 %v1092_v1 }
  0x8e   : > { %795 = vmatpush3.bf16.msra.mxu0 %v905_v42 }
 0x14a   : > { %v314_v10 = vpop.f32.mrb[0].mxu1 }
 0x14b   : > { %v316_v11 = vpop.f32.mrb[1].mxu1 }
 0x14c   : > { %v742_v12 = vpack.c.bf16 %v316_v11, %v314_v10  ;;  %v318_v13 = vpop.f32.mrb[2].mxu1 }
 0x14d   : > { %v319_v14 = vpop.f32.mrb[3].mxu1 }
 0x14e   : > { %374 = vst [vmem:[#allocation2] sm:$0xff] %v742_v12 }
 0x152   : > { %v355_v17 = vpop.f32.mrb[4].mxu1 }
 0x153   : > { %v743_v18 = vpack.c.bf16 %v355_v17, %v355_v17  ;;  %v766_v19 = vpop.f32.mrb[5].mxu1 }
 0x154   : > { %v358_v20 = vpop.f32.mrb[6].mxu1 }
 0x155   : > { %v383_v15 = vld [vmem:[#allocation2 + $0x4] sm:$0xf]  ;;  %v382_v16 = vld [vmem:[#allocation2] sm:$0xf]  ;;  %375 = vst [vmem:[#allocation2 + $0x8] sm:$0xf] %v743_v18 }
 0x156   : > { %769 = vmatpush3.bf16.xpose.msra.mxu1 %v383_v15  ;;  %v767_v21 = vpop.f32.mrb[7].mxu1 }
 0x157   : > { %774 = vmatprep.subr.bf16.mxu1 %v1092_v1 }
 0x15c   : > { %v384_v22 = vld [vmem:[#allocation2 + $0x8] sm:$0xf] }
 0x15d   : > { %771 = vmatmul.mubr.bf16.vlgmr.msra.gmra.mrb[8].mxu1 %v382_v16  ;;  %v442_v23 = vsel %vm440_vm2, %v384_v22, 0 }
 0x15e   : > { %776 = vmatprep.mubr.msk.bf16.mxu1 %vm1093_vm1, %v1092_v1  ;;  %775 = vmatpush3.bf16.msra.mxu1 %v442_v23 }
 0x230   : > { %v419_v24 = vpop.f32.mrb[8].mxu1 }
 0x231   : > { %v772_v25 = vpop.f32.mrb[9].mxu1  ;;  %v426_v26 = vsel %vm425_vm3, %v419_v24, -inf }
 0x232   : > { %427 = vmax.xlane.f32.xlu0 %v426_v26  ;;  %v422_v27 = vpop.f32.mrb[10].mxu1 }
 0x233   : > { %v773_v28 = vpop.f32.mrb[11].mxu1 }
 0x2bf   : > { %v428_v29 = vpop.xlane.xlu0 %427 }
 0x2c0   : > { %v429_v30 = vsub.f32 %v419_v24, %v428_v29 }
 0x2c2   : > { %v430_v31 = vmul.f32 1.442695, %v429_v30 }
 0x2c4   : > { %906 = vpow2.f32 %v430_v31 }
 0x2ce   : > { %v907_v32 = vpop.eup %906 }
 0x2cf   : > { %v432_v33 = vsel %vm425_vm3, %v907_v32, 0.0  ;;  %v436_v34 = vpack.c.bf16 %v907_v32, %v907_v32 }
 0x2d0   : > { %433 = vadd.xlane.f32.xlu0 %v432_v33 }
 0x2d1   : > { %777 = vmatmul.mubr.msk.bf16.vlgmr.msra.gmra.mrb[12].mxu1 %vm425_vm3, %v436_v34 }
 0x35d   : > { %v434_v43 = vpop.xlane.xlu0 %433 }
 0x35e   : > { %908 = vrcp.f32 %v434_v43 }
 0x368   : > { %v909_v44 = vpop.eup %908 }
 0x3a4   : > { %v478_v45 = vpop.f32.mrb[12].mxu1 }
 0x3a5   : > { %v484_v46 = vmul.f32 %v909_v44, %v478_v45  ;;  %v778_v47 = vpop.f32.mrb[13].mxu1 }
 0x3a6   : > { %v481_v48 = vpop.f32.mrb[14].mxu1 }
 0x3a7   : > { %v485_v49 = vpack.c.bf16 %v484_v46, %v484_v46  ;;  %v779_v50 = vpop.f32.mrb[15].mxu1 }
 0x3a9   : > { %797 = vmatmul.mubr.bf16.vlgmr.msra.gmra.mrb[0].mxu0 %v485_v49 }
 0x47c   : > { %v584_v51 = vpop.f32.mrb[0].mxu0 }
 0x47d   : > { %590 = vst [vmem:[%s228_s20] sm:$0xff] %v584_v51  ;;  %v798_v52 = vpop.f32.mrb[1].mxu0 }
 0x47e   : > { %v587_v53 = vpop.f32.mrb[2].mxu0 }
 0x47f   : > { %1009 = shalt.err (!%p1006_p11)
}
 0x480   : > { %s1010_s6 = scalar_lea.hbm %s1342_s9, 128  ;;  %s1014_s11 = scalar_lea.hbm %s1392_s3, 256 }
 0x481   : > { %p1011_p0 = scmp.ne.s32.totalorder %s1342_s9, %s1010_s6  ;;  %p1015_p6 = scmp.lt.u32.totalorder %s1342_s9, %s1392_s3 }
 0x482   : > { %p1016_p7 = scmp.lt.u32.totalorder %s1014_s11, %s1010_s6  ;;  %p1018_p8 = scmp.lt.u32.totalorder %s1010_s6, %s1342_s9 }
 0x483   : > { %p1012_p4 = pnand %p1011_p0, %p1407_p12 }
 0x484   : > { %p1017_p2 = por %p1016_p7, %p1015_p6 }
 0x485   : > { %p1013_p13 = pneg %p1012_p4 }
 0x486   : > { %p1019_p1 = por %p1018_p8, %p1017_p2 }
 0x488   : > { %p1020_p10 = pnand %p1019_p1, %p1013_p13 }
 0x48a   : > { %1023 = shalt.err (!%p1020_p10)
}
 0x48b   : > { %810 = dma.vmem_to_hbm [thread:$0]  (%p1407_p12), %s1337_s22, 128, %s1342_s9, %s592_s10   ;;  %v799_v54 = vpop.f32.mrb[3].mxu0 }
 0x48c PF: > { %s618_s27 = sand.u32 1, %s1062_s12   ;;  %p1408_p3 = scmp.ne.s32.totalorder %s1400_s23, 0 }
 0x48d   : > { %p1409_p5 = scmp.ge.s32.totalorder %s1082_s17, 2  ;;  %s619_s20 = scalar_lea.sflag [#allocation5], %s618_s27 }
 0x48f   : > { %p824_p9 = pnand %p1409_p5, %p1408_p3 }
 0x491   : > { %1057 = dma.done.wait (!%p824_p9), %s619_s20, 128  }
 0x492   : > { %1059 = vsyncadd (!%p824_p9), %s619_s20, 4294967168  ;;  %s20_s17 = sadd.s32 1, %s1082_s17   ;;  %s1410_s12 = smov %s1066_s13 }
 0x493   : > { %p17_p11 = scmp.ge.s32.totalorder %s20_s17, 4   ;;  %s1411_s13 = smov %s1070_s14 }
 0x494   : > { %s1412_s14 = smov %s1257_s5  ;;  %s1413_s15 = smov %s1078_s16 }
 0x495   : > { %s1414_s16 = smov %s1416_s19  ;;  %19 = sbr.rel (!%p17_p11) target bundleno = 7 (0x7), region = 90 }
 0x49c   :  { %624 = vsyncpa [#allocation4], 1 }
 0x49d   :  { %626 = vsyncpa [#allocation4 + $0x1], 1 }
 0x49e   :  { %627 = vsyncpa [#allocation7], 1 }
 0x49f   :  { %628 = vsyncpa [#allocation5], 1 }
 0x4a0   :  { %630 = vsyncpa [#allocation5 + $0x1], 1 }

</bundles_post_ra>
